<compile_context>
chip_gen: v7x
topology: tpu7x:2x2x1
jax: 0.10.0
libtpu: 0.0.40
codegen_flags: <defaults>
</compile_context>

<pallas_src>
import functools

import jax
import jax.numpy as jnp
from jax.experimental import pallas as pl
from jax.experimental.pallas import tpu as pltpu


def _stats_kernel(ignore_index, has_weight, *refs):
    if has_weight:
        logits_ref, target_ref, weight_ref, nll_ref, prob_ref, perw_ref = refs
    else:
        logits_ref, target_ref, nll_ref, prob_ref = refs
        weight_ref = perw_ref = None

    x = logits_ref[...].astype(jnp.float32)           # (C, T)  classes on sublanes
    tgt = target_ref[...]                             # (1, T)  int32

    valid = tgt != ignore_index                       # (1, T)
    tgt_c = jnp.where(valid, tgt, 0)                  # target * valid_mask

    # numerically stable log-softmax over the class (sublane) axis
    m = jnp.max(x, axis=0, keepdims=True)             # (1, T)
    z = x - m
    lse = jnp.log(jnp.sum(jnp.exp(z), axis=0, keepdims=True))   # (1, T)

    c, t = x.shape
    cls = jax.lax.broadcasted_iota(jnp.int32, (c, t), 0)
    onehot = (cls == tgt_c).astype(jnp.float32)        # (C, T)

    tgt_logp = jnp.sum(z * onehot, axis=0, keepdims=True) - lse  # (1, T)

    nll_ref[...] = -tgt_logp
    # prob of the target class; invalid pixels get 1.0 (== masked_fill_(~valid, 1))
    prob_ref[...] = jnp.where(valid, jnp.exp(tgt_logp), 1.0)

    if has_weight:
        wv = weight_ref[...].astype(jnp.float32)        # (C, 1)
        perw_ref[...] = jnp.sum(wv * onehot, axis=0, keepdims=True)


def _loss_kernel(ignore_index, has_weight, hw, t_hw, thr_ref, *refs):
    if has_weight:
        nll_ref, prob_ref, tgt_ref, perw_ref, out_ref, acc_ref = refs
    else:
        nll_ref, prob_ref, tgt_ref, out_ref, acc_ref = refs
        perw_ref = None

    i = pl.program_id(0)
    j = pl.program_id(1)

    @pl.when(jnp.logical_and(i == 0, j == 0))
    def _():
        acc_ref[0] = 0.0
        acc_ref[1] = 0.0

    nll = nll_ref[...]                                  # (1, T)
    prob = prob_ref[...]
    tgt = tgt_ref[...]

    # keep = valid & (prob <= threshold). When OHEM is disabled the wrapper
    # passes threshold = 2.0 (> any prob), so keep degenerates to `valid`.
    keep = jnp.logical_and(tgt != ignore_index, prob <= thr_ref[0])

    if hw % t_hw != 0:
        # mask the out-of-range lanes of the (partial) tail block
        col = jax.lax.broadcasted_iota(jnp.int32, prob.shape, 1) + j * t_hw
        keep = jnp.logical_and(keep, col < hw)

    if has_weight:
        w = perw_ref[...]
        num = jnp.where(keep, nll * w, 0.0)
        den = jnp.where(keep, w, 0.0)
    else:
        num = jnp.where(keep, nll, 0.0)
        den = keep.astype(jnp.float32)

    acc_ref[0] += jnp.sum(num)
    acc_ref[1] += jnp.sum(den)

    @pl.when(jnp.logical_and(i == pl.num_programs(0) - 1,
                             j == pl.num_programs(1) - 1))
    def _():
        # NOTE: all-ignored input gives 0/0 = NaN, matching torch's
        # CrossEntropyLoss(reduction='mean') behavior.
        out_ref[0] = acc_ref[0] / acc_ref[1]


def ohem_cross_entropy_2d(emb, target, *, ignore_index=255, thresh=0.7,
                          min_kept=10000, class_weight=None, tile_hw=8192):
    """emb: (N, C, H, W) float; target: (N, H, W) int in [0, C) or ignore_index."""
    n, c, h, w = emb.shape
    hw = h * w
    p = n * hw

    # native layout (free reshapes, no transpose, no padding):
    logits = emb.reshape(n, c, hw)                     # (N, C, HW)
    tgt = target.reshape(n, 1, hw).astype(jnp.int32)   # (N, 1, HW)

    has_weight = class_weight is not None

    # --- tile sizing: lane dim multiple of 128 (or full HW); cap logits block
    #     at ~4 MiB so double-buffering stays well inside v7x's 64 MiB VMEM.
    if hw <= tile_hw:
        t_hw = hw
    else:
        cap = max(128, ((4 * 1024 * 1024) // (4 * c)) // 128 * 128)
        t_hw = min(tile_hw, cap)
        t_hw = max(128, (t_hw // 128) * 128)
    n_hw = pl.cdiv(hw, t_hw)
    grid = (n, n_hw)

    px_spec = pl.BlockSpec((None, 1, t_hw), lambda i, j: (i, 0, j))

    # ---- Kernel 1: per-pixel NLL / target-class prob (+ optional weight) ----
    stats_in_specs = [
        pl.BlockSpec((None, c, t_hw), lambda i, j: (i, 0, j)),   # logits
        px_spec,                                                 # target
    ]
    stats_inputs = [logits, tgt]
    n_out = 2
    if has_weight:
        wvec = jnp.asarray(class_weight, jnp.float32).reshape(c, 1)
        stats_in_specs.append(pl.BlockSpec((c, 1), lambda i, j: (0, 0)))
        stats_inputs.append(wvec)
        n_out = 3

    stats_out = pl.pallas_call(
        functools.partial(_stats_kernel, ignore_index, has_weight),
        out_shape=[jax.ShapeDtypeStruct((n, 1, hw), jnp.float32)] * n_out,
        grid_spec=pltpu.PrefetchScalarGridSpec(
            num_scalar_prefetch=0,
            grid=grid,
            in_specs=stats_in_specs,
            out_specs=[px_spec] * n_out,
        ),
        compiler_params=pltpu.CompilerParams(
            dimension_semantics=("parallel", "parallel")),
    )(*stats_inputs)

    if has_weight:
        nll, prob, perw = stats_out
    else:
        nll, prob = stats_out
        perw = None

    # ---- OHEM hard-example mining (JAX glue) ----
    num_valid = jnp.sum((target.reshape(-1) != ignore_index).astype(jnp.int32))
    # TODO(synk): the reference prints 'Labels: {num_valid}' when
    # min_kept > num_valid; data-dependent logging has no Pallas/JAX equivalent.

    if min_kept > 0:
        k = int(min(p, min_kept))
        # k-th-smallest prob via top_k of negated probs (much cheaper than sort)
        neg_topk, _ = jax.lax.top_k(-prob.reshape(-1), k)
        kth = -neg_topk[k - 1]
        ohem_thr = jnp.maximum(kth, jnp.asarray(thresh, jnp.float32))
        apply_ohem = jnp.logical_and(num_valid >= min_kept, num_valid > 0)
        # when OHEM is not applied, a threshold of 2.0 keeps every valid pixel
        eff_thr = jnp.where(apply_ohem, ohem_thr, jnp.asarray(2.0, jnp.float32))
    else:
        eff_thr = jnp.asarray(2.0, jnp.float32)

    thr_arr = eff_thr.reshape(1).astype(jnp.float32)

    # ---- Kernel 2: fused keep-mask + weighted CE mean reduction ----
    loss_in_specs = [
        pl.BlockSpec(memory_space=pltpu.MemorySpace.SMEM),   # threshold scalar
        px_spec,                                             # nll
        px_spec,                                             # prob
        px_spec,                                             # target
    ]
    loss_inputs = [thr_arr, nll, prob, tgt]
    if has_weight:
        loss_in_specs.append(px_spec)
        loss_inputs.append(perw)

    loss = pl.pallas_call(
        functools.partial(_loss_kernel, ignore_index, has_weight, hw, t_hw),
        out_shape=jax.ShapeDtypeStruct((1,), jnp.float32),
        grid_spec=pltpu.PrefetchScalarGridSpec(
            num_scalar_prefetch=0,
            grid=grid,
            in_specs=loss_in_specs,
            out_specs=pl.BlockSpec(memory_space=pltpu.MemorySpace.SMEM),
            scratch_shapes=[pltpu.SMEM((2,), jnp.float32)],
        ),
        compiler_params=pltpu.CompilerParams(
            dimension_semantics=("arbitrary", "arbitrary")),
    )(*loss_inputs)

    return loss[0]


if __name__ == "__main__":
    key = jax.random.PRNGKey(0)
    k1, k2, k3 = jax.random.split(key, 3)

    N, C, H, W = 2, 4, 16, 16
    emb = jax.random.normal(k1, (N, C, H, W), jnp.float32)
    target = jax.random.randint(k2, (N, H, W), 0, C)
    ignore_mask = jax.random.bernoulli(k3, 0.1, (N, H, W))
    target = jnp.where(ignore_mask, 255, target).astype(jnp.int32)

    # min_kept=100 < num_valid so the OHEM branch is exercised at this small size.
    loss = ohem_cross_entropy_2d(emb, target, ignore_index=255, thresh=0.7,
                                 min_kept=100, class_weight=None)
    jax.block_until_ready(loss)

    # use_weight=True path (per-class weights, here a 4-class stand-in)
    wvec = jnp.asarray([0.8373, 0.918, 0.866, 1.0345], jnp.float32)
    loss_w = ohem_cross_entropy_2d(emb, target, ignore_index=255, thresh=0.7,
                                   min_kept=100, class_weight=wvec)
    jax.block_until_ready(loss_w)

    print("KERNEL_OK")
</pallas_src>

<mosaic_0001>
module attributes {stable_mosaic.version = 11 : i64} {
  func.func @_stats_kernel(%arg0: i32, %arg1: i32, %arg2: memref<1x4x256xf32, #tpu.memory_space<vmem>>, %arg3: memref<1x1x256xi32, #tpu.memory_space<vmem>>, %arg4: memref<1x1x256xf32, #tpu.memory_space<vmem>>, %arg5: memref<1x1x256xf32, #tpu.memory_space<vmem>>) attributes {dimension_semantics = [#tpu.dimension_semantics<parallel>, #tpu.dimension_semantics<parallel>], iteration_bounds = array<i64: 2, 1>, scalar_prefetch = 0 : i64, scratch_operands = 0 : i64, tpu.core_type = #tpu.core_type<tc>, window_params = [{transform_indices = @transform_0, window_bounds = array<i64: 1, 4, 256>}, {transform_indices = @transform_1, window_bounds = array<i64: 1, 1, 256>}, {transform_indices = @transform_2, window_bounds = array<i64: 1, 1, 256>}, {transform_indices = @transform_3, window_bounds = array<i64: 1, 1, 256>}]} {
    %c0 = arith.constant 0 : index
    %c0_0 = arith.constant 0 : index
    %c0_1 = arith.constant 0 : index
    %0 = vector.load %arg2[%c0, %c0_0, %c0_1] : memref<1x4x256xf32, #tpu.memory_space<vmem>>, vector<1x4x256xf32>
    %1 = vector.shape_cast %0 : vector<1x4x256xf32> to vector<4x256xf32>
    %c0_2 = arith.constant 0 : index
    %c0_3 = arith.constant 0 : index
    %c0_4 = arith.constant 0 : index
    %2 = vector.load %arg3[%c0_2, %c0_3, %c0_4] : memref<1x1x256xi32, #tpu.memory_space<vmem>>, vector<1x1x256xi32>
    %3 = vector.shape_cast %2 : vector<1x1x256xi32> to vector<1x256xi32>
    %c255_i32 = arith.constant 255 : i32
    %4 = vector.broadcast %c255_i32 : i32 to vector<1x256xi32>
    %5 = arith.cmpi ne, %3, %4 : vector<1x256xi32>
    %c0_i32 = arith.constant 0 : i32
    %6 = vector.broadcast %c0_i32 : i32 to vector<1x256xi32>
    %7 = arith.select %5, %3, %6 : vector<1x256xi1>, vector<1x256xi32>
    %cst = arith.constant dense<0xFF800000> : vector<256xf32>
    %8 = vector.multi_reduction <maximumf>, %1, %cst [0] : vector<4x256xf32> to vector<256xf32>
    %9 = vector.shape_cast %8 : vector<256xf32> to vector<1x256xf32>
    %10 = vector.broadcast %9 : vector<1x256xf32> to vector<4x256xf32>
    %11 = arith.subf %1, %10 : vector<4x256xf32>
    %12 = math.exp %11 : vector<4x256xf32>
    %cst_5 = arith.constant dense<0.000000e+00> : vector<256xf32>
    %13 = vector.multi_reduction <add>, %12, %cst_5 [0] : vector<4x256xf32> to vector<256xf32>
    %14 = vector.shape_cast %13 : vector<256xf32> to vector<1x256xf32>
    %15 = math.log %14 : vector<1x256xf32>
    %16 = tpu.iota {dimensions = array<i32: 0>} : vector<4x256xi32>
    %17 = vector.broadcast %7 : vector<1x256xi32> to vector<4x256xi32>
    %18 = arith.cmpi eq, %16, %17 : vector<4x256xi32>
    %19 = arith.extui %18 : vector<4x256xi1> to vector<4x256xi32>
    %20 = arith.sitofp %19 : vector<4x256xi32> to vector<4x256xf32>
    %21 = arith.mulf %11, %20 : vector<4x256xf32>
    %cst_6 = arith.constant dense<0.000000e+00> : vector<256xf32>
    %22 = vector.multi_reduction <add>, %21, %cst_6 [0] : vector<4x256xf32> to vector<256xf32>
    %23 = vector.shape_cast %22 : vector<256xf32> to vector<1x256xf32>
    %24 = arith.subf %23, %15 : vector<1x256xf32>
    %cst_7 = arith.constant 0.000000e+00 : f32
    %25 = vector.broadcast %cst_7 : f32 to vector<1x256xf32>
    %26 = arith.subf %25, %24 : vector<1x256xf32>
    %c0_8 = arith.constant 0 : index
    %c0_9 = arith.constant 0 : index
    %c0_10 = arith.constant 0 : index
    %27 = vector.load %arg4[%c0_8, %c0_9, %c0_10] : memref<1x1x256xf32, #tpu.memory_space<vmem>>, vector<1x1x256xf32>
    %28 = vector.shape_cast %27 : vector<1x1x256xf32> to vector<1x256xf32>
    %29 = vector.shape_cast %26 : vector<1x256xf32> to vector<1x1x256xf32>
    tpu.vector_store %arg4[%c0_8, %c0_9, %c0_10], %29 {strides = array<i32>} : memref<1x1x256xf32, #tpu.memory_space<vmem>>, vector<1x1x256xf32>,
    %30 = math.exp %24 : vector<1x256xf32>
    %cst_11 = arith.constant 1.000000e+00 : f32
    %31 = vector.broadcast %cst_11 : f32 to vector<1x256xf32>
    %32 = arith.select %5, %30, %31 : vector<1x256xi1>, vector<1x256xf32>
    %c0_12 = arith.constant 0 : index
    %c0_13 = arith.constant 0 : index
    %c0_14 = arith.constant 0 : index
    %33 = vector.load %arg5[%c0_12, %c0_13, %c0_14] : memref<1x1x256xf32, #tpu.memory_space<vmem>>, vector<1x1x256xf32>
    %34 = vector.shape_cast %33 : vector<1x1x256xf32> to vector<1x256xf32>
    %35 = vector.shape_cast %32 : vector<1x256xf32> to vector<1x1x256xf32>
    tpu.vector_store %arg5[%c0_12, %c0_13, %c0_14], %35 {strides = array<i32>} : memref<1x1x256xf32, #tpu.memory_space<vmem>>, vector<1x1x256xf32>,
    return
  }
  func.func @transform_0(%arg0: i32, %arg1: i32) -> (i32, i32, i32) {
    %c0_i32 = arith.constant 0 : i32
    %c0_i32_0 = arith.constant 0 : i32
    return %arg0, %c0_i32, %arg1 : i32, i32, i32
  }
  func.func @transform_1(%arg0: i32, %arg1: i32) -> (i32, i32, i32) {
    %c0_i32 = arith.constant 0 : i32
    %c0_i32_0 = arith.constant 0 : i32
    return %arg0, %c0_i32, %arg1 : i32, i32, i32
  }
  func.func @transform_2(%arg0: i32, %arg1: i32) -> (i32, i32, i32) {
    %c0_i32 = arith.constant 0 : i32
    %c0_i32_0 = arith.constant 0 : i32
    return %arg0, %c0_i32, %arg1 : i32, i32, i32
  }
  func.func @transform_3(%arg0: i32, %arg1: i32) -> (i32, i32, i32) {
    %c0_i32 = arith.constant 0 : i32
    %c0_i32_0 = arith.constant 0 : i32
    return %arg0, %c0_i32, %arg1 : i32, i32, i32
  }
}

</mosaic_0001>

<bundles_post_ra>
// kernel: tpu_custom_call.1
= control target key start
LH: loop header
LB: loop body
LE: loop exit
PB: predicated region body
PF: predicated region fallthrough
CT: control target
= control target key end

     0   :  { %9 = vsyncpa [#allocation3], 0  ;;  %s1190_s0 = inlined_call_operand.hbm [shape: f32[2,4,256], index: 0, kind: input, shape index: {}]   ;;  %s1191_s1 = inlined_call_operand.hbm [shape: s32[2,1,256], index: 1, kind: input, shape index: {}]   ;;  %s1192_s2 = inlined_call_operand.hbm [shape: f32[2,1,256], index: 2, kind: output, shape index: {0}]   ;;  %s1193_s3 = inlined_call_operand.hbm [shape: f32[2,1,256], index: 3, kind: output, shape index: {1}]  }
   0x1   :  { %11 = vsyncpa [#allocation3 + $0x1], 0 }
   0x2   :  { %12 = vsyncpa [#allocation6], 0 }
   0x3   :  { %14 = vsyncpa [#allocation6 + $0x1], 0 }
   0x4   :  { %15 = vsyncpa [#allocation4], 0 }
   0x5   :  { %17 = vsyncpa [#allocation4 + $0x1], 0 }
   0x6   :  { %18 = vsyncpa [#allocation9], 0 }
   0x7   :  { %20 = vsyncpa [#allocation9 + $0x1], 0  ;;  %s906_s12 = smov 0   ;;  %s908_s13 = smov 0  }
   0x8   :  { %s910_s14 = smov 0   ;;  %s912_s15 = smov 0  }
   0x9   :  { %s914_s16 = smov 0   ;;  %s916_s17 = smov 0  }
   0xa LB: > { %s586_s18 = sadd.s32 4294967295, %s878_s17   ;;  %s587_s19 = sadd.s32 4294967294, %s878_s17   ;;  %s878_s17 = sphi %s916_s17, %s26_s17   ;;  %s874_s16 = sphi %s914_s16, %s1215_s16   ;;  %s870_s15 = sphi %s912_s15, %s1214_s15   ;;  %s866_s14 = sphi %s910_s14, %s1213_s14   ;;  %s862_s13 = sphi %s908_s13, %s1212_s13   ;;  %s858_s12 = sphi %s906_s12, %s1211_s12  }
   0xb   : > { %s38_s20 = sadd.s32 1, %s874_s16  ;;  %s47_s21 = sadd.s32 1, %s866_s14 }
   0xc   : > { %p40_p0 = scmp.ge.s32.totalorder %s38_s20, 2  ;;  %p54_p1 = scmp.ne.s32.totalorder %s866_s14, %s862_s13 }
   0xd   : > { %p55_p2 = scmp.eq.s32.totalorder %s878_s17, 0  ;;  %p60_p3 = scmp.ne.s32.totalorder %s862_s13, %s858_s12 }
   0xe   : > { %s1217_s20 = smov (%p40_p0, %s38_s20), 0  ;;  %p61_p5 = scmp.eq.s32.totalorder %s586_s18, 0 }
   0xf   : > { %p947_p4 = por %p55_p2, %p54_p1  ;;  %s42_s23 = ssub.s32 %s874_s16, %s1217_s20 }
  0x10   : > { %p114_p6 = scmp.eq.s32.totalorder %s586_s18, 1  ;;  %p45_p7 = scmp.eq.s32.totalorder %s42_s23, 0 }
  0x11   : > { %p953_p8 = por %p61_p5, %p60_p3  ;;  %p120_p10 = scmp.eq.s32.totalorder %s587_s19, 1 }
  0x12   : > { %p957_p9 = por %p114_p6, %p54_p1  ;;  %p637_p13 = scmp.lt.s32.totalorder %s878_s17, 2 }
  0x13   : > { %s1197_s24 = scalar_select %p953_p8, 1, 0 }
  0x14   : > { %s1198_s25 = scalar_select %p957_p9, 1, 0 }
  0x15   : > { %s962_s26 = scalar_select %p45_p7, %s866_s14, %s47_s21  }
  0x16   : > { %p964_p11 = por %p120_p10, %p60_p3  ;;  %s971_s28 = sand.u32 1, %s866_s14  }
  0x17   : > { %s590_s29 = sshll.u32 %s971_s28, 3  ;;  %s611_s30 = sshll.u32 %s874_s16, 7 }
  0x18   : > { %s1199_s27 = scalar_select %p964_p11, 1, 0 }
  0x19   : > { %s978_s6 = scalar_lea.hbm %s1190_s0, %s611_s30  ;;  %s172_s7 = scalar_lea.vmem [#allocation2], %s590_s29 }
  0x1a   : > { %s182_s8 = sshll.u32 %s172_s7, 4  ;;  %p984_p0 = pnand %p637_p13, %p947_p4  ;;  %s980_s8 = int_to_ptr.vmem [resolvable:$true] %s182_s8 }
  0x1b   : > { %s169_s10 = scalar_lea.sflag [#allocation3], %s971_s28  ;;  %s700_s11 = scalar_lea.hbm %s978_s6, 128 }
  0x1c   : > { %p701_p3 = scmp.ne.s32.totalorder %s978_s6, %s700_s11  ;;  %p702_p5 = pneg %p984_p0 }
  0x1d   : > { %s705_s21 = scalar_lea.hbm %s1190_s0, 256  ;;  %p706_p4 = scmp.lt.u32.totalorder %s978_s6, %s1190_s0 }
  0x1e   : > { %p703_p6 = pnand %p702_p5, %p701_p3  ;;  %p707_p10 = scmp.lt.u32.totalorder %s705_s21, %s700_s11 }
  0x1f   : > { %p709_p12 = scmp.lt.u32.totalorder %s700_s11, %s978_s6 }
  0x20   : > { %p704_p7 = pneg %p703_p6  ;;  %p708_p13 = por %p707_p10, %p706_p4 }
  0x22   : > { %p710_p1 = por %p709_p12, %p708_p13 }
  0x24   : > { %p711_p2 = pnand %p710_p1, %p704_p7 }
  0x26   : > { %714 = shalt.err (!%p711_p2)
}
  0x27   : > { %s715_s29 = scalar_lea.vmem %s980_s8, 128  ;;  %s880_s30 = smov [#allocation2]  }
  0x28   : > { %p716_p3 = scmp.ne.s32.totalorder %s980_s8, %s715_s29  ;;  %s720_s4 = sshll.u32 %s880_s30, 4  ;;  %s721_s4 = int_to_ptr.vmem [resolvable:$false] %s720_s4 }
  0x29   : > { %s722_s5 = scalar_lea.vmem %s721_s4, 256  ;;  %p723_p9 = scmp.lt.s32.totalorder %s980_s8, %s721_s4 }
  0x2a   : > { %p718_p6 = pnand %p716_p3, %p702_p5  ;;  %p724_p4 = scmp.lt.s32.totalorder %s722_s5, %s715_s29 }
  0x2c   : > { %p719_p11 = pneg %p718_p6  ;;  %p725_p10 = por %p724_p4, %p723_p9 }
  0x2e   : > { %p726_p12 = pnand %p725_p10, %p719_p11 }
  0x30   : > { %729 = shalt.err (!%p726_p12)
}
  0x31   : > { %626 = dma.hbm_to_vmem [thread:$0]  (!%p984_p0), %s978_s6, 128, %s980_s8, %s169_s10  }
  0x32   : > { %p1201_p1 = scmp.lt.s32.totalorder %s878_s17, 3  ;;  %p1202_p2 = scmp.ge.s32.totalorder %s878_s17, 1 }
  0x33   : > { %s593_s11 = sshll.u32 %s971_s28, 1  ;;  %s612_s18 = sshll.u32 %s874_s16, 5 }
  0x34   : > { %p1020_p7 = pnand %p1202_p2, %p1201_p1  ;;  %s1029_s22 = scalar_lea.hbm %s1191_s1, %s612_s18 }
  0x35   : > { %s193_s23 = scalar_lea.vmem [#allocation5], %s593_s11  ;;  %s190_s6 = scalar_lea.sflag [#allocation6], %s971_s28 }
  0x36   : > { %s1203_s7 = scalar_select %p1020_p7, 1, 0 }
  0x37   : > { %s203_s29 = sshll.u32 %s193_s23, 4  ;;  %s730_s8 = scalar_lea.hbm %s1029_s22, 32  ;;  %s204_s29 = int_to_ptr.vmem [resolvable:$true] %s203_s29 }
  0x38   : > { %p731_p9 = scmp.ne.s32.totalorder %s1029_s22, %s730_s8  ;;  %s735_s4 = scalar_lea.hbm %s1191_s1, 64 }
  0x39   : > { %p736_p3 = scmp.lt.u32.totalorder %s1029_s22, %s1191_s1  ;;  %p737_p6 = scmp.lt.u32.totalorder %s735_s4, %s730_s8 }
  0x3a   : > { %p733_p11 = pnand %p731_p9, %p702_p5  ;;  %p739_p10 = scmp.lt.u32.totalorder %s730_s8, %s1029_s22 }
  0x3b   : > { %p738_p4 = por %p737_p6, %p736_p3 }
  0x3c   : > { %p734_p13 = pneg %p733_p11 }
  0x3d   : > { %p740_p12 = por %p739_p10, %p738_p4 }
  0x3f   : > { %p741_p1 = pnand %p740_p12, %p734_p13 }
  0x41   : > { %744 = shalt.err (!%p741_p1)
}
  0x42   : > { %s745_s28 = scalar_lea.vmem %s204_s29, 32  ;;  %s881_s11 = smov [#allocation5]  }
  0x43   : > { %p746_p2 = scmp.ne.s32.totalorder %s204_s29, %s745_s28  ;;  %s750_s19 = sshll.u32 %s881_s11, 4  ;;  %s751_s19 = int_to_ptr.vmem [resolvable:$false] %s750_s19 }
  0x44   : > { %s752_s21 = scalar_lea.vmem %s751_s19, 64  ;;  %p753_p8 = scmp.lt.s32.totalorder %s204_s29, %s751_s19 }
  0x45   : > { %p748_p9 = pnand %p746_p2, %p702_p5  ;;  %p754_p7 = scmp.lt.s32.totalorder %s752_s21, %s745_s28 }
  0x47   : > { %p749_p11 = pneg %p748_p9  ;;  %p755_p3 = por %p754_p7, %p753_p8 }
  0x49   : > { %p756_p6 = pnand %p755_p3, %p749_p11 }
  0x4b   : > { %759 = shalt.err (!%p756_p6)
}
  0x4c   : > { %629 = dma.hbm_to_vmem [thread:$0]  (!%p984_p0), %s1029_s22, 32, %s204_s29, %s190_s6  }
  0x4d   : > { %p1204_p13 = scmp.ne.s32.totalorder %s1203_s7, 0 }
  0x4e   : > { %s1054_s23 = sand.u32 (!%p1204_p13), 1, %s862_s13   ;;  %p1205_p5 = scmp.ne.s32.totalorder (!%p1204_p13), %s1197_s24, 0 }
  0x4f   : > { %212 = sbr.rel (%p1204_p13) target bundleno = 199 (0xc7), region = 28  ;;  %s597_s8 = sshll.u32 (!%p1204_p13), %s1054_s23, 3 }
  0x50   : > { %s215_s10 = scalar_lea.sflag (!%p1204_p13), [#allocation3], %s1054_s23  ;;  %s218_s30 = scalar_lea.vmem (!%p1204_p13), [#allocation2], %s597_s8 }
  0x56   : > { %841 = dma.done.wait (%p1205_p5), %s215_s10, 128  }
  0x57   : > { %843 = vsyncadd (%p1205_p5), %s215_s10, 4294967168  ;;  %s1063_s9 = sshll.u32 %s1054_s23, 1  ;;  %s224_s7 = scalar_lea.sflag [#allocation6], %s1054_s23 }
  0x58   : > { %s227_s22 = scalar_lea.vmem [#allocation5], %s1063_s9 }
  0x59   : > { %845 = dma.done.wait (%p1205_p5), %s224_s7, 32  }
  0x5a   : > { %847 = vsyncadd (%p1205_p5), %s224_s7, 4294967264  ;;  %vm271_vm0 = vcmask 1043456   ;;  %v264_v0 = vld [vmem:[%s218_s30] sm:$0xff]  ;;  %v314_v1 = vlaneseq  ;;  %v1072_v5 = vld [vmem:[%s227_s22] sm:$0x3]  ;;  %v882_v26 = vmov 0.0  }
  0x5b   : > { %v269_v2 = vcombine.high %v264_v0, %v264_v0  ;;  %v272_v3 = vsel %vm271_vm0, %v264_v0, -inf  ;;  %vm266_vm1 = vcmp.ne.s32.totalorder %v1072_v5, 255  ;;  %v883_v62 = vmov 1966171168   ;;  %s252_s24 = scalar_lea.vmem [#allocation7], %s1063_s9  ;;  %s613_s6 = sshll.u32 %s870_s15, 5 }
  0x5c   : > { %v273_v4 = vrot.slane %v272_v3, 4  ;;  %v1076_v9 = vshrl.u32 %v314_v1, 7  ;;  %v267_v16 = vsel %vm266_vm1, %v1072_v5, 0  ;;  %v360_v63 = vunpack.c.l.s4 %v883_v62  ;;  %s425_s29 = sshll.u32 %s252_s24, 4  ;;  %s1105_s18 = scalar_lea.hbm %s1192_s2, %s613_s6  ;;  %s1098_s29 = int_to_ptr.vmem [resolvable:$true] %s425_s29 }
  0x5d   : > { %v279_v6 = vsel %vm271_vm0, %v269_v2, -inf  ;;  %vm1094_vm4 = vcmp.lt.s32.totalorder %v314_v1, 256  ;;  %s404_s28 = scalar_lea.sflag [#allocation4], %s1054_s23  ;;  %s760_s11 = scalar_lea.vmem %s1098_s29, 32 }
  0x5e   : > { %v274_v7 = vmax.f32 %v272_v3, %v273_v4  ;;  %v280_v8 = vrot.slane %v279_v6, 4  ;;  %v318_v14 = vsub.s32 0, %v1076_v9  ;;  %v322_v15 = vsub.s32 1, %v1076_v9  ;;  %p761_p8 = scmp.ne.s32.totalorder %s1098_s29, %s760_s11  ;;  %p1208_p0 = scmp.ne.s32.totalorder %s1198_s25, 0 }
  0x5f   : > { %s884_s19 = smov [#allocation7]  }
  0x60   : > { %v275_v10 = vrot.slane %v274_v7, 2  ;;  %v281_v11 = vmax.f32 %v279_v6, %v280_v8  ;;  %v319_v21 = vrot.slane %v267_v16, %v318_v14  ;;  %v323_v22 = vrot.slane %v267_v16, %v322_v15  ;;  %p762_p7 = pnand %p761_p8, %p1208_p0  ;;  %s764_s21 = sshll.u32 %s884_s19, 4  ;;  %s765_s21 = int_to_ptr.vmem [resolvable:$false] %s764_s21 }
  0x61   : > { %v361_v8 = vunpack.c.0.s8 %v360_v63  ;;  %s766_s8 = scalar_lea.vmem %s765_s21, 64  ;;  %p767_p10 = scmp.lt.s32.totalorder %s1098_s29, %s765_s21 }
  0x62   : > { %v276_v12 = vmax.f32 %v274_v7, %v275_v10  ;;  %v282_v13 = vrot.slane %v281_v11, 2  ;;  %vm324_vm2 = vcmp.eq.s32.totalorder %v1076_v9, %v319_v21  ;;  %vm325_vm3 = vcmp.eq.s32.totalorder %v1076_v9, %v323_v22  ;;  %p763_p4 = pneg %p762_p7  ;;  %p768_p12 = scmp.lt.s32.totalorder %s766_s8, %s760_s11 }
  0x63   : > { %v601_v27 = vsel %vm324_vm2, 1.0, %v882_v26  ;;  %v602_v28 = vsel %vm325_vm3, 1.0, %v882_v26  ;;  %v364_v14 = vsub.s32 %v361_v8, %v1076_v9 }
  0x64   : > { %v277_v17 = vrot.slane %v276_v12, 1  ;;  %v283_v18 = vmax.f32 %v281_v11, %v282_v13  ;;  %v332_v30 = vcombine.low %v601_v27, %v602_v28  ;;  %p769_p1 = por %p768_p12, %p767_p10 }
  0x66   : > { %v278_v19 = vmax.f32 %v276_v12, %v277_v17  ;;  %v284_v20 = vrot.slane %v283_v18, 1  ;;  %p770_p2 = pnand %p769_p1, %p763_p4 }
  0x68   : > { %v285_v23 = vmax.f32 %v283_v18, %v284_v20 }
  0x6a   : > { %v288_v24 = vcombine.low %v278_v19, %v285_v23 }
  0x6c   : > { %v290_v25 = vsub.f32 %v264_v0, %v288_v24 }
  0x6e   : > { %v291_v29 = vmul.f32 1.442695, %v290_v25  ;;  %v334_v31 = vmul.f32 %v332_v30, %v290_v25 }
  0x70   : > { %690 = vpow2.f32 %v291_v29  ;;  %v336_v32 = vcombine.high %v334_v31, %v334_v31  ;;  %v338_v34 = vsel %vm271_vm0, %v334_v31, 0.0 }
  0x71   : > { %v339_v40 = vrot.slane %v338_v34, 4 }
  0x72   : > { %v345_v38 = vsel %vm271_vm0, %v336_v32, 0.0 }
  0x73   : > { %v346_v43 = vrot.slane %v345_v38, 4  ;;  %v340_v46 = vadd.f32 %v339_v40, %v338_v34 }
  0x75   : > { %v347_v49 = vadd.f32 %v346_v43, %v345_v38  ;;  %v341_v52 = vrot.slane %v340_v46, 2 }
  0x77   : > { %v348_v55 = vrot.slane %v347_v49, 2  ;;  %v342_v57 = vadd.f32 %v341_v52, %v340_v46 }
  0x79   : > { %v349_v58 = vadd.f32 %v348_v55, %v347_v49  ;;  %v343_v59 = vrot.slane %v342_v57, 1 }
  0x7a   : > { %v691_v33 = vpop.eup %690 }
  0x7b   : > { %v294_v35 = vcombine.high %v691_v33, %v691_v33  ;;  %v296_v36 = vsel %vm271_vm0, %v691_v33, 0.0  ;;  %v350_v60 = vrot.slane %v349_v58, 1  ;;  %v344_v61 = vadd.f32 %v343_v59, %v342_v57 }
  0x7c   : > { %v297_v37 = vrot.slane %v296_v36, 4 }
  0x7d   : > { %v303_v39 = vsel %vm271_vm0, %v294_v35, 0.0  ;;  %v351_v3 = vadd.f32 %v350_v60, %v349_v58 }
  0x7e   : > { %v298_v41 = vadd.f32 %v297_v37, %v296_v36  ;;  %v304_v42 = vrot.slane %v303_v39, 4 }
  0x80   : > { %v299_v44 = vrot.slane %v298_v41, 2  ;;  %v305_v45 = vadd.f32 %v304_v42, %v303_v39 }
  0x82   : > { %v300_v47 = vadd.f32 %v299_v44, %v298_v41  ;;  %v306_v48 = vrot.slane %v305_v45, 2 }
  0x84   : > { %v301_v50 = vrot.slane %v300_v47, 1  ;;  %v307_v51 = vadd.f32 %v306_v48, %v305_v45 }
  0x86   : > { %v302_v53 = vadd.f32 %v301_v50, %v300_v47  ;;  %v308_v54 = vrot.slane %v307_v51, 1 }
  0x88   : > { %v309_v56 = vadd.f32 %v308_v54, %v307_v51  ;;  %692 = vlog2.f32 %v302_v53 }
  0x8a   : > { %694 = vlog2.f32 %v309_v56 }
  0x92   : > { %v693_v0 = vpop.eup %692 }
  0x93   : > { %v311_v2 = vmul.f32 0.6931472, %v693_v0 }
  0x94   : > { %v695_v4 = vpop.eup %694 }
  0x95   : > { %v313_v6 = vmul.f32 0.6931472, %v695_v4  ;;  %v352_v7 = vsub.f32 %v344_v61, %v311_v2 }
  0x97   : > { %v353_v10 = vsub.f32 %v351_v3, %v313_v6  ;;  %v354_v11 = vsub.f32 0.0, %v352_v7  ;;  %v379_v12 = vmul.f32 1.442695, %v352_v7 }
  0x99   : > { %v355_v13 = vsub.f32 0.0, %v353_v10  ;;  %696 = vpow2.f32 %v379_v12  ;;  %v381_v15 = vmul.f32 1.442695, %v353_v10 }
  0x9b   : > { %v358_v16 = vcombine.low %v354_v11, %v355_v13  ;;  %698 = vpow2.f32 %v381_v15 }
  0x9d   : > { %v365_v17 = vrot.slane %v358_v16, %v364_v14 }
  0x9f   : > { %v372_v9 = vrot.slane %v365_v17, %v364_v14 }
  0xa1   : > { %378 = vst.msk [vmem:[%s252_s24] sm:$0x3] %vm1094_vm4, %v372_v9 }
  0xa2   : > { %773 = shalt.err (!%p770_p2)
}
  0xa3   : > { %s774_s10 = scalar_lea.hbm %s1105_s18, 32  ;;  %s778_s22 = scalar_lea.hbm %s1192_s2, 64 }
  0xa4   : > { %p775_p9 = scmp.ne.s32.totalorder %s1105_s18, %s774_s10  ;;  %p779_p6 = scmp.lt.u32.totalorder %s1105_s18, %s1192_s2 }
  0xa5   : > { %p780_p13 = scmp.lt.u32.totalorder %s778_s22, %s774_s10  ;;  %p782_p8 = scmp.lt.u32.totalorder %s774_s10, %s1105_s18 }
  0xa6   : > { %p776_p11 = pnand %p775_p9, %p1208_p0 }
  0xa7   : > { %p781_p5 = por %p780_p13, %p779_p6 }
  0xa8   : > { %p777_p3 = pneg %p776_p11 }
  0xa9   : > { %p783_p7 = por %p782_p8, %p781_p5 }
  0xab   : > { %p784_p4 = pnand %p783_p7, %p777_p3 }
  0xad   : > { %787 = shalt.err (!%p784_p4)
}
  0xae   : > { %619 = dma.vmem_to_hbm [thread:$0]  (%p1208_p0), %s1098_s29, 32, %s1105_s18, %s404_s28   ;;  %v697_v1 = vpop.eup %696 }
  0xaf   : > { %v699_v19 = vpop.eup %698  ;;  %s259_s5 = scalar_lea.vmem [#allocation8], %s1063_s9  ;;  %s1139_s8 = scalar_lea.hbm %s1193_s3, %s613_s6 }
  0xb0   : > { %v385_v20 = vcombine.low %v697_v1, %v699_v19  ;;  %s441_s11 = sshll.u32 %s259_s5, 4  ;;  %s409_s9 = scalar_lea.sflag [#allocation9], %s1054_s23  ;;  %s1132_s11 = int_to_ptr.vmem [resolvable:$true] %s441_s11 }
  0xb1   : > { %s788_s29 = scalar_lea.vmem %s1132_s11, 32  ;;  %s885_s15 = smov [#allocation8]  }
  0xb2   : > { %v392_v21 = vrot.slane %v385_v20, %v364_v14  ;;  %p789_p10 = scmp.ne.s32.totalorder %s1132_s11, %s788_s29  ;;  %s792_s18 = sshll.u32 %s885_s15, 4  ;;  %s793_s18 = int_to_ptr.vmem [resolvable:$false] %s792_s18 }
  0xb3   : > { %s794_s28 = scalar_lea.vmem %s793_s18, 64  ;;  %p795_p2 = scmp.lt.s32.totalorder %s1132_s11, %s793_s18 }
  0xb4   : > { %v399_v22 = vrot.slane %v392_v21, %v364_v14  ;;  %p790_p12 = pnand %p789_p10, %p1208_p0  ;;  %p796_p9 = scmp.lt.s32.totalorder %s794_s28, %s788_s29 }
  0xb6   : > { %v401_v23 = vsel %vm266_vm1, %v399_v22, 1.0  ;;  %p791_p1 = pneg %p790_p12  ;;  %p797_p11 = por %p796_p9, %p795_p2 }
  0xb7   : > { %402 = vst.msk [vmem:[%s259_s5] sm:$0x3] %vm1094_vm4, %v401_v23 }
  0xb8   : > { %p798_p3 = pnand %p797_p11, %p791_p1 }
  0xba   : > { %801 = shalt.err (!%p798_p3)
}
  0xbb   : > { %s802_s23 = scalar_lea.hbm %s1139_s8, 32  ;;  %s806_s30 = scalar_lea.hbm %s1193_s3, 64 }
  0xbc   : > { %p803_p6 = scmp.ne.s32.totalorder %s1139_s8, %s802_s23  ;;  %p807_p8 = scmp.lt.u32.totalorder %s1139_s8, %s1193_s3 }
  0xbd   : > { %p808_p7 = scmp.lt.u32.totalorder %s806_s30, %s802_s23  ;;  %p810_p10 = scmp.lt.u32.totalorder %s802_s23, %s1139_s8 }
  0xbe   : > { %p804_p13 = pnand %p803_p6, %p1208_p0 }
  0xbf   : > { %p809_p4 = por %p808_p7, %p807_p8 }
  0xc0   : > { %p805_p5 = pneg %p804_p13 }
  0xc1   : > { %p811_p12 = por %p810_p10, %p809_p4 }
  0xc3   : > { %p812_p1 = pnand %p811_p12, %p805_p5 }
  0xc5   : > { %815 = shalt.err (!%p812_p1)
}
  0xc6   : > { %620 = dma.vmem_to_hbm [thread:$0]  (%p1208_p0), %s1132_s11, 32, %s1139_s8, %s409_s9  }
  0xc7 PF: > { %s453_s24 = sand.u32 1, %s858_s12   ;;  %p1209_p2 = scmp.ne.s32.totalorder %s1199_s27, 0 }
  0xc8   : > { %p1210_p9 = scmp.ge.s32.totalorder %s878_s17, 2  ;;  %s454_s4 = scalar_lea.sflag [#allocation4], %s453_s24 }
  0xca   : > { %p631_p11 = pnand %p1210_p9, %p1209_p2 }
  0xcc   : > { %849 = dma.done.wait (!%p631_p11), %s454_s4, 32  }
  0xcd   : > { %851 = vsyncadd (!%p631_p11), %s454_s4, 4294967264  ;;  %s463_s5 = scalar_lea.sflag [#allocation9], %s453_s24 }
  0xce   : > { %853 = dma.done.wait (!%p631_p11), %s463_s5, 32  }
  0xcf   : > { %855 = vsyncadd (!%p631_p11), %s463_s5, 4294967264  ;;  %s26_s17 = sadd.s32 1, %s878_s17   ;;  %s1211_s12 = smov %s862_s13 }
  0xd0   : > { %p23_p3 = scmp.ge.s32.totalorder %s26_s17, 4   ;;  %s1212_s13 = smov %s866_s14 }
  0xd1   : > { %s1213_s14 = smov %s962_s26  ;;  %s1214_s15 = smov %s874_s16 }
  0xd2   : > { %s1215_s16 = smov %s1217_s20  ;;  %25 = sbr.rel (!%p23_p3) target bundleno = 10 (0xa), region = 103 }
  0xd9   :  { %468 = vsyncpa [#allocation3], 1 }
  0xda   :  { %470 = vsyncpa [#allocation3 + $0x1], 1 }
  0xdb   :  { %471 = vsyncpa [#allocation6], 1 }
  0xdc   :  { %473 = vsyncpa [#allocation6 + $0x1], 1 }
  0xdd   :  { %474 = vsyncpa [#allocation4], 1 }
  0xde   :  { %476 = vsyncpa [#allocation4 + $0x1], 1 }
  0xdf   :  { %477 = vsyncpa [#allocation9], 1 }
  0xe0   :  { %479 = vsyncpa [#allocation9 + $0x1], 1 }

</bundles_post_ra>
